<compile_context>
chip_gen: v7x
topology: tpu7x:2x2x1
jax: 0.10.0
libtpu: 0.0.40
codegen_flags: <defaults>
</compile_context>

<pallas_src>
import jax
import jax.numpy as jnp
from jax.experimental import pallas as pl
from jax.experimental.pallas import tpu as pltpu

LANES = 128
SUBLANES = 8
MAX_CORES = 2             # shard row loop over 2 TCs (v7x); harmless on 1-TC chips
DEFAULT_ROW_TILE = 2048   # (2048,128) f32 tile = 1 MiB; 2 inputs x 2 buffers = 4 MiB VMEM


def _make_dice_kernel(rows, row_tile, steps_per_core, need_mask):
    groups = row_tile // SUBLANES

    def kernel(pred_ref, target_ref, inter_ref, sum_ref):
        c = pl.program_id(0)   # core (parallel) axis
        i = pl.program_id(1)   # sequential row-tile axis

        # Zero this core's resident partial-sum vregs on its first step.
        @pl.when(i == 0)
        def _init():
            inter_ref[...] = jnp.zeros_like(inter_ref)
            sum_ref[...] = jnp.zeros_like(sum_ref)

        # Cast inside the kernel (VPU, mem-bound anyway); inputs stream in
        # their native dtype.
        p = pred_ref[...].astype(jnp.float32)
        t = target_ref[...].astype(jnp.float32)

        if need_mask:
            # Mask rows past the true row count (tail / clamped extra block).
            base = (c * steps_per_core + i) * row_tile
            rid = jax.lax.broadcasted_iota(jnp.int32, (row_tile, LANES), 0)
            valid = (base + rid) < rows
            p = jnp.where(valid, p, 0.0)
            t = jnp.where(valid, t, 0.0)

        # Sublane/lane-partial sums: pure vreg-wise VPU adds, no per-step
        # cross-lane (XLU) reduction.  The reshape splits whole (8,128) tiles,
        # so it is layout-preserving.
        p3 = p.reshape(groups, SUBLANES, LANES)
        t3 = t.reshape(groups, SUBLANES, LANES)
        inter_ref[0] += jnp.sum(p3 * t3, axis=0)       # partial sum(p*t)
        sum_ref[0] += jnp.sum(p3 + t3, axis=0)         # partial sum(p)+sum(t)

    return kernel


def dice_loss(pred, target, smooth=1.0):
    """Pallas TPU implementation of DiceLoss.forward(pred, target)."""
    assert pred.shape == target.shape, "pred/target must have the same shape"

    flat_p = pred.reshape(-1)
    flat_t = target.reshape(-1)
    total = flat_p.shape[0]

    # Only pad (with zeros, which don't change any of the sums) when the
    # element count isn't a multiple of 8*128; the common aligned case streams
    # the original buffers untouched.
    align = SUBLANES * LANES
    pad = (-total) % align
    if pad:
        flat_p = jnp.pad(flat_p, (0, pad))
        flat_t = jnp.pad(flat_t, (0, pad))
    rows = (total + pad) // LANES

    pred2d = flat_p.reshape(rows, LANES)
    target2d = flat_t.reshape(rows, LANES)

    row_tile = min(DEFAULT_ROW_TILE, rows)       # rows is a multiple of 8
    n_blocks = -(-rows // row_tile)
    ncores = min(MAX_CORES, n_blocks)            # avoid wasted duplicate reads
    steps_per_core = -(-n_blocks // ncores)
    need_mask = (ncores * steps_per_core * row_tile) != rows
    max_block = n_blocks - 1

    def in_index_map(c, i):
        # Clamp so the (rare) extra step on the second core maps to a valid
        # block; its contribution is zeroed by the in-kernel row mask.
        return (jnp.minimum(c * steps_per_core + i, max_block), 0)

    acc_shape = jax.ShapeDtypeStruct((ncores, SUBLANES, LANES), jnp.float32)
    acc_spec = pl.BlockSpec((1, SUBLANES, LANES), lambda c, i: (c, 0, 0))

    kernel = _make_dice_kernel(rows, row_tile, steps_per_core, need_mask)

    inter_p, sum_p = pl.pallas_call(
        kernel,
        out_shape=(acc_shape, acc_shape),
        grid_spec=pltpu.PrefetchScalarGridSpec(
            num_scalar_prefetch=0,
            grid=(ncores, steps_per_core),
            in_specs=[
                pl.BlockSpec((row_tile, LANES), in_index_map),
                pl.BlockSpec((row_tile, LANES), in_index_map),
            ],
            out_specs=[acc_spec, acc_spec],
        ),
        compiler_params=pltpu.CompilerParams(
            dimension_semantics=("parallel", "arbitrary"),
        ),
    )(pred2d, target2d)

    # Tiny epilogue on (ncores, 8, 128) partials: single cross-lane reduce.
    intersection = jnp.sum(inter_p)
    ab_sum = jnp.sum(sum_p)
    dice = 2.0 * intersection / (ab_sum + smooth)
    return 1.0 - dice


def dice_loss_ref(pred, target):
    smooth = 1.0
    p = pred.astype(jnp.float32)
    t = target.astype(jnp.float32)
    intersection = jnp.sum(p * t)
    dice = 2.0 * intersection / (jnp.sum(p) + jnp.sum(t) + smooth)
    return 1.0 - dice


if __name__ == "__main__":
    key = jax.random.PRNGKey(0)
    k1, k2 = jax.random.split(key)
    # NCHW, same convention as the PyTorch module's typical segmentation use.
    pred = jax.nn.sigmoid(jax.random.normal(k1, (2, 4, 16, 16), dtype=jnp.float32))
    target = (jax.random.uniform(k2, (2, 4, 16, 16)) > 0.5).astype(jnp.float32)

    out = dice_loss(pred, target)
    jax.block_until_ready(out)

    ref = dice_loss_ref(pred, target)
    assert jnp.allclose(out, ref, atol=1e-5, rtol=1e-5), (out, ref)
    print("KERNEL_OK")
</pallas_src>

<mosaic_0001>
module attributes {stable_mosaic.version = 11 : i64} {
  func.func @kernel(%arg0: i32, %arg1: i32, %arg2: memref<16x128xf32, #tpu.memory_space<vmem>>, %arg3: memref<16x128xf32, #tpu.memory_space<vmem>>, %arg4: memref<1x8x128xf32, #tpu.memory_space<vmem>>, %arg5: memref<1x8x128xf32, #tpu.memory_space<vmem>>) attributes {dimension_semantics = [#tpu.dimension_semantics<parallel>, #tpu.dimension_semantics<arbitrary>], iteration_bounds = array<i64: 1, 1>, scalar_prefetch = 0 : i64, scratch_operands = 0 : i64, tpu.core_type = #tpu.core_type<tc>, window_params = [{transform_indices = @transform_0, window_bounds = array<i64: 16, 128>}, {transform_indices = @transform_1, window_bounds = array<i64: 16, 128>}, {transform_indices = @transform_2, window_bounds = array<i64: 1, 8, 128>}, {transform_indices = @transform_3, window_bounds = array<i64: 1, 8, 128>}]} {
    %c0_i32 = arith.constant 0 : i32
    %0 = arith.cmpi eq, %arg1, %c0_i32 : i32
    %1 = arith.extui %0 : i1 to i32
    %c0_i32_0 = arith.constant 0 : i32
    %2 = arith.cmpi ne, %1, %c0_i32_0 : i32
    scf.if %2 {
      %cst_17 = arith.constant 0.000000e+00 : f32
      %23 = vector.broadcast %cst_17 : f32 to vector<1x8x128xf32>
      %c0_18 = arith.constant 0 : index
      %c0_19 = arith.constant 0 : index
      %c0_20 = arith.constant 0 : index
      %24 = vector.load %arg4[%c0_18, %c0_19, %c0_20] : memref<1x8x128xf32, #tpu.memory_space<vmem>>, vector<1x8x128xf32>
      tpu.vector_store %arg4[%c0_18, %c0_19, %c0_20], %23 {strides = array<i32>} : memref<1x8x128xf32, #tpu.memory_space<vmem>>, vector<1x8x128xf32>,
      %cst_21 = arith.constant 0.000000e+00 : f32
      %25 = vector.broadcast %cst_21 : f32 to vector<1x8x128xf32>
      %c0_22 = arith.constant 0 : index
      %c0_23 = arith.constant 0 : index
      %c0_24 = arith.constant 0 : index
      %26 = vector.load %arg5[%c0_22, %c0_23, %c0_24] : memref<1x8x128xf32, #tpu.memory_space<vmem>>, vector<1x8x128xf32>
      tpu.vector_store %arg5[%c0_22, %c0_23, %c0_24], %25 {strides = array<i32>} : memref<1x8x128xf32, #tpu.memory_space<vmem>>, vector<1x8x128xf32>,
    } else {
    }
    %c0 = arith.constant 0 : index
    %c0_1 = arith.constant 0 : index
    %3 = vector.load %arg2[%c0, %c0_1] : memref<16x128xf32, #tpu.memory_space<vmem>>, vector<16x128xf32>
    %c0_2 = arith.constant 0 : index
    %c0_3 = arith.constant 0 : index
    %4 = vector.load %arg3[%c0_2, %c0_3] : memref<16x128xf32, #tpu.memory_space<vmem>>, vector<16x128xf32>
    %5 = vector.shape_cast %3 : vector<16x128xf32> to vector<2x8x128xf32>
    %6 = vector.shape_cast %4 : vector<16x128xf32> to vector<2x8x128xf32>
    %c0_4 = arith.constant 0 : index
    %c0_5 = arith.constant 0 : index
    %c0_6 = arith.constant 0 : index
    %7 = vector.load %arg4[%c0_4, %c0_5, %c0_6] : memref<1x8x128xf32, #tpu.memory_space<vmem>>, vector<1x8x128xf32>
    %8 = vector.shape_cast %7 : vector<1x8x128xf32> to vector<8x128xf32>
    %9 = arith.mulf %5, %6 : vector<2x8x128xf32>
    %cst = arith.constant dense<0.000000e+00> : vector<8x128xf32>
    %10 = vector.multi_reduction <add>, %9, %cst [0] : vector<2x8x128xf32> to vector<8x128xf32>
    %11 = arith.addf %8, %10 : vector<8x128xf32>
    %c0_7 = arith.constant 0 : index
    %c0_8 = arith.constant 0 : index
    %c0_9 = arith.constant 0 : index
    %12 = vector.load %arg4[%c0_7, %c0_8, %c0_9] : memref<1x8x128xf32, #tpu.memory_space<vmem>>, vector<1x8x128xf32>
    %13 = vector.shape_cast %12 : vector<1x8x128xf32> to vector<8x128xf32>
    %14 = vector.shape_cast %11 : vector<8x128xf32> to vector<1x8x128xf32>
    tpu.vector_store %arg4[%c0_7, %c0_8, %c0_9], %14 {strides = array<i32>} : memref<1x8x128xf32, #tpu.memory_space<vmem>>, vector<1x8x128xf32>,
    %c0_10 = arith.constant 0 : index
    %c0_11 = arith.constant 0 : index
    %c0_12 = arith.constant 0 : index
    %15 = vector.load %arg5[%c0_10, %c0_11, %c0_12] : memref<1x8x128xf32, #tpu.memory_space<vmem>>, vector<1x8x128xf32>
    %16 = vector.shape_cast %15 : vector<1x8x128xf32> to vector<8x128xf32>
    %17 = arith.addf %5, %6 : vector<2x8x128xf32>
    %cst_13 = arith.constant dense<0.000000e+00> : vector<8x128xf32>
    %18 = vector.multi_reduction <add>, %17, %cst_13 [0] : vector<2x8x128xf32> to vector<8x128xf32>
    %19 = arith.addf %16, %18 : vector<8x128xf32>
    %c0_14 = arith.constant 0 : index
    %c0_15 = arith.constant 0 : index
    %c0_16 = arith.constant 0 : index
    %20 = vector.load %arg5[%c0_14, %c0_15, %c0_16] : memref<1x8x128xf32, #tpu.memory_space<vmem>>, vector<1x8x128xf32>
    %21 = vector.shape_cast %20 : vector<1x8x128xf32> to vector<8x128xf32>
    %22 = vector.shape_cast %19 : vector<8x128xf32> to vector<1x8x128xf32>
    tpu.vector_store %arg5[%c0_14, %c0_15, %c0_16], %22 {strides = array<i32>} : memref<1x8x128xf32, #tpu.memory_space<vmem>>, vector<1x8x128xf32>,
    return
  }
  func.func @transform_0(%arg0: i32, %arg1: i32) -> (i32, i32) {
    %c1_i32 = arith.constant 1 : i32
    %0 = arith.muli %arg0, %c1_i32 : i32
    %1 = arith.addi %0, %arg1 : i32
    %c0_i32 = arith.constant 0 : i32
    %2 = arith.minsi %1, %c0_i32 : i32
    %c0_i32_0 = arith.constant 0 : i32
    %c0_i32_1 = arith.constant 0 : i32
    return %2, %c0_i32_0 : i32, i32
  }
  func.func @transform_1(%arg0: i32, %arg1: i32) -> (i32, i32) {
    %c1_i32 = arith.constant 1 : i32
    %0 = arith.muli %arg0, %c1_i32 : i32
    %1 = arith.addi %0, %arg1 : i32
    %c0_i32 = arith.constant 0 : i32
    %2 = arith.minsi %1, %c0_i32 : i32
    %c0_i32_0 = arith.constant 0 : i32
    %c0_i32_1 = arith.constant 0 : i32
    return %2, %c0_i32_0 : i32, i32
  }
  func.func @transform_2(%arg0: i32, %arg1: i32) -> (i32, i32, i32) {
    %c0_i32 = arith.constant 0 : i32
    %c0_i32_0 = arith.constant 0 : i32
    %c0_i32_1 = arith.constant 0 : i32
    return %arg0, %c0_i32, %c0_i32_0 : i32, i32, i32
  }
  func.func @transform_3(%arg0: i32, %arg1: i32) -> (i32, i32, i32) {
    %c0_i32 = arith.constant 0 : i32
    %c0_i32_0 = arith.constant 0 : i32
    %c0_i32_1 = arith.constant 0 : i32
    return %arg0, %c0_i32, %c0_i32_0 : i32, i32, i32
  }
}

</mosaic_0001>

<bundles_post_ra>
// kernel: tpu_custom_call.1
= control target key start
LH: loop header
LB: loop body
LE: loop exit
PB: predicated region body
PF: predicated region fallthrough
CT: control target
= control target key end

     0   :  { %9 = vsyncpa [#allocation3], 0  ;;  %s296_s0 = inlined_call_operand.hbm [shape: f32[16,128], index: 0, kind: input, shape index: {}]   ;;  %s297_s1 = inlined_call_operand.hbm [shape: f32[16,128], index: 1, kind: input, shape index: {}]   ;;  %s298_s2 = inlined_call_operand.hbm [shape: f32[1,8,128], index: 2, kind: output, shape index: {0}]   ;;  %s299_s3 = inlined_call_operand.hbm [shape: f32[1,8,128], index: 3, kind: output, shape index: {1}]  }
   0x1   :  { %10 = vsyncpa [#allocation6], 0 }
   0x2   :  { %11 = vsyncpa [#allocation4], 0 }
   0x3   :  { %12 = vsyncpa [#allocation9], 0  ;;  %s222_s12 = smov [#allocation2]   ;;  %s126_s16 = scalar_lea.hbm %s296_s0, 256 }
   0x4   :  { %s24_s13 = sshll.u32 %s222_s12, 4  ;;  %p127_p0 = scmp.ne.s32.totalorder %s296_s0, %s126_s16  ;;  %s25_s13 = int_to_ptr.vmem [resolvable:$true] %s24_s13 }
   0x5   :  { %p130_p1 = scmp.lt.u32.totalorder %s126_s16, %s296_s0 }
   0x7   :  { %p132_p2 = pnand %p130_p1, %p127_p0 }
   0x9   :  { %135 = shalt.err (!%p132_p2)
}
   0xa   :  { %s136_s21 = scalar_lea.vmem %s25_s13, 256  ;;  %p141_p4 = scmp.lt.s32.totalorder %s25_s13, %s25_s13 }
   0xb   :  { %p137_p3 = scmp.ne.s32.totalorder %s25_s13, %s136_s21  ;;  %p142_p5 = scmp.lt.s32.totalorder %s136_s21, %s136_s21 }
   0xd   :  { %p143_p6 = por %p142_p5, %p141_p4 }
   0xf   :  { %p144_p7 = pnand %p143_p6, %p137_p3 }
  0x11   :  { %147 = shalt.err (!%p144_p7)
}
  0x12   :  { %s223_s22 = smov 128   ;;  %s224_s23 = smov 8  }
  0x13   :  { %30 = dma.hbm_to_vmem [thread:$0]  %s296_s0, 256, %s25_s13, [#allocation3], %s223_s22, %s223_s22, %s224_s23  }
  0x14   :  { %s225_s26 = smov [#allocation5]   ;;  %s148_s30 = scalar_lea.hbm %s297_s1, 256 }
  0x15   :  { %s42_s27 = sshll.u32 %s225_s26, 4  ;;  %p149_p8 = scmp.ne.s32.totalorder %s297_s1, %s148_s30  ;;  %s43_s27 = int_to_ptr.vmem [resolvable:$true] %s42_s27 }
  0x16   :  { %p152_p9 = scmp.lt.u32.totalorder %s148_s30, %s297_s1 }
  0x18   :  { %p154_p10 = pnand %p152_p9, %p149_p8 }
  0x1a   :  { %157 = shalt.err (!%p154_p10)
}
  0x1b   :  { %s158_s8 = scalar_lea.vmem %s43_s27, 256  ;;  %p163_p12 = scmp.lt.s32.totalorder %s43_s27, %s43_s27 }
  0x1c   :  { %p159_p11 = scmp.ne.s32.totalorder %s43_s27, %s158_s8  ;;  %p164_p13 = scmp.lt.s32.totalorder %s158_s8, %s158_s8 }
  0x1e   :  { %p165_p0 = por %p164_p13, %p163_p12 }
  0x20   :  { %p166_p1 = pnand %p165_p0, %p159_p11 }
  0x22   :  { %169 = shalt.err (!%p166_p1)
}
  0x23   :  { %48 = dma.hbm_to_vmem [thread:$0]  %s297_s1, 256, %s43_s27, [#allocation6], %s223_s22, %s223_s22, %s224_s23  }
  0x24   :  { %214 = dma.done.wait [#allocation3], 256  }
  0x25   :  { %215 = vsyncadd [#allocation3], 4294967040 }
  0x26   :  { %216 = dma.done.wait [#allocation6], 256  }
  0x27   :  { %217 = vsyncadd [#allocation6], 4294967040  ;;  %v69_v0 = vld [vmem:[#allocation2] sm:$0xff]  ;;  %v70_v1 = vld [vmem:[#allocation2 + $0x8] sm:$0xff]  ;;  %s226_s10 = smov [#allocation7]   ;;  %s227_s12 = smov [#allocation8]  }
  0x28   :  { %v71_v2 = vld [vmem:[#allocation5] sm:$0xff]  ;;  %v72_v3 = vld [vmem:[#allocation5 + $0x8] sm:$0xff]  ;;  %s91_s11 = sshll.u32 %s226_s10, 4  ;;  %s101_s13 = sshll.u32 %s227_s12, 4  ;;  %s92_s11 = int_to_ptr.vmem [resolvable:$true] %s91_s11  ;;  %s102_s13 = int_to_ptr.vmem [resolvable:$true] %s101_s13 }
  0x29   :  { %v74_v4 = vmul.f32 %v71_v2, %v69_v0  ;;  %v80_v5 = vadd.f32 %v71_v2, %v69_v0  ;;  %v75_v6 = vmul.f32 %v72_v3, %v70_v1  ;;  %v81_v7 = vadd.f32 %v72_v3, %v70_v1  ;;  %s170_s1 = scalar_lea.vmem %s92_s11, 128  ;;  %p175_p3 = scmp.lt.s32.totalorder %s92_s11, %s92_s11 }
  0x2a   :  { %p171_p2 = scmp.ne.s32.totalorder %s92_s11, %s170_s1  ;;  %p176_p4 = scmp.lt.s32.totalorder %s170_s1, %s170_s1 }
  0x2b   :  { %v76_v8 = vadd.f32 %v75_v6, %v74_v4  ;;  %v82_v9 = vadd.f32 %v81_v7, %v80_v5 }
  0x2c   :  { %p177_p5 = por %p176_p4, %p175_p3 }
  0x2d   :  { %78 = vst [vmem:[#allocation7] sm:$0xff] %v76_v8  ;;  %84 = vst [vmem:[#allocation8] sm:$0xff] %v82_v9 }
  0x2e   :  { %p178_p6 = pnand %p177_p5, %p171_p2 }
  0x30   :  { %181 = shalt.err (!%p178_p6)
}
  0x31   :  { %s182_s16 = scalar_lea.hbm %s298_s2, 128 }
  0x32   :  { %p183_p7 = scmp.ne.s32.totalorder %s298_s2, %s182_s16  ;;  %p186_p8 = scmp.lt.u32.totalorder %s182_s16, %s298_s2 }
  0x34   :  { %p188_p9 = pnand %p186_p8, %p183_p7 }
  0x36   :  { %191 = shalt.err (!%p188_p9)
}
  0x37   :  { %94 = dma.vmem_to_hbm [thread:$0]  %s92_s11, 128, %s298_s2, [#allocation4]  }
  0x38   :  { %s192_s23 = scalar_lea.vmem %s102_s13, 128  ;;  %p197_p11 = scmp.lt.s32.totalorder %s102_s13, %s102_s13 }
  0x39   :  { %p193_p10 = scmp.ne.s32.totalorder %s102_s13, %s192_s23  ;;  %p198_p12 = scmp.lt.s32.totalorder %s192_s23, %s192_s23 }
  0x3b   :  { %p199_p13 = por %p198_p12, %p197_p11 }
  0x3d   :  { %p200_p0 = pnand %p199_p13, %p193_p10 }
  0x3f   :  { %203 = shalt.err (!%p200_p0)
}
  0x40   :  { %s204_s26 = scalar_lea.hbm %s299_s3, 128 }
  0x41   :  { %p205_p1 = scmp.ne.s32.totalorder %s299_s3, %s204_s26  ;;  %p208_p2 = scmp.lt.u32.totalorder %s204_s26, %s299_s3 }
  0x43   :  { %p210_p3 = pnand %p208_p2, %p205_p1 }
  0x45   :  { %213 = shalt.err (!%p210_p3)
}
  0x46   :  { %104 = dma.vmem_to_hbm [thread:$0]  %s102_s13, 128, %s299_s3, [#allocation9]  }
  0x47   :  { %218 = dma.done.wait [#allocation4], 128  }
  0x48   :  { %219 = vsyncadd [#allocation4], 4294967168 }
  0x49   :  { %220 = dma.done.wait [#allocation9], 128  }
  0x4a   :  { %221 = vsyncadd [#allocation9], 4294967168 }
  0x4b   :  { %111 = vsyncpa [#allocation3], 1 }
  0x4c   :  { %112 = vsyncpa [#allocation6], 1 }
  0x4d   :  { %113 = vsyncpa [#allocation4], 1 }
  0x4e   :  { %114 = vsyncpa [#allocation9], 1 }

</bundles_post_ra>
